<compile_context>
chip_gen: v7x
topology: tpu7x:2x2x1
jax: 0.10.0
libtpu: 0.0.40
codegen_flags: <defaults>
</compile_context>

<pallas_src>
import functools

import numpy as np
import jax
import jax.numpy as jnp
from jax.experimental import pallas as pl
from jax.experimental.pallas import tpu as pltpu

# ----- synthetic "SMPL" sizes (small, consistent with model_type='smpl') -----
B = 2              # batch_size
V = 256            # number of vertices (synthetic small mesh)
J = 24             # joints (root_orient 3 + pose_body 63 + pose_hand 6 = 72 = 24*3)
NB = 10            # num_betas
P = (J - 1) * 9    # 207 pose-feature dims
F = NB + P         # 217 raw blend-feature dims
FP = 224           # padded feature dim (217 + 1 ones-column for v_template, padded to x8)
JE = 32            # padded joint dim   (24  + 1 ones-row    for trans,     padded to x8)
BRP = 8            # padded (batch*3) row count: one row per (batch, out-coordinate)

DT = jnp.float32


# ============================ Pallas kernel ==================================

def fused_lbs_kernel(feat_ref, w_ref, aT_ref, wT_ref, out_ref):
    """Fused shape/pose blend + LBS skinning, single grid step.

    feat_ref: (BRP, FP)   row 3b+k = [betas_b, pose_feature_b, 1, 0...]  (rows >= 3B are 0)
    w_ref:    (FP, 3V)    [shapedirs; posedirs; v_template; 0] coordinate-major flat (k*V+v)
    aT_ref:   (4*BRP, JE) row c*BRP + (3b+k), col j = A_rel[b,j,k,c]; col 24 = trans[b,k] (c==3)
    wT_ref:   (JE, V)     skinning weights^T, row 24 = ones (trans), rows 25.. = 0
    out_ref:  (BRP, V)    row 3b+k = coordinate k of the skinned+translated verts of batch b
    """
    # Stage 1: v_posed, coordinate-major, one row per (batch, out-coordinate).
    # RV[3b+k, c*V + v] = v_posed[b, v, c]   (rows >= 3B are zero padding)
    rv = jnp.dot(feat_ref[...], w_ref[...], preferred_element_type=jnp.float32)   # (BRP, 3V)

    # Stage 2: per-vertex affine rows T[b, v, k, c] (+ trans on the c==3 block).
    tt = jnp.dot(aT_ref[...], wT_ref[...], preferred_element_type=jnp.float32)    # (4*BRP, V)

    # Stage 3: skin — three full-block FMAs + translation block, one dense store.
    out_ref[...] = (tt[0 * BRP:1 * BRP] * rv[:, 0 * V:1 * V]
                    + tt[1 * BRP:2 * BRP] * rv[:, 1 * V:2 * V]
                    + tt[2 * BRP:3 * BRP] * rv[:, 2 * V:3 * V]
                    + tt[3 * BRP:4 * BRP])


def run_fused_lbs(feat_rep, w_comb, aT_ext, wT_ext):
    # Single grid step: everything (w_comb ~0.7 MB dominates) is VMEM-resident.
    return pl.pallas_call(
        fused_lbs_kernel,
        out_shape=jax.ShapeDtypeStruct((BRP, V), DT),
        grid_spec=pltpu.PrefetchScalarGridSpec(
            num_scalar_prefetch=0,
            grid=(1,),
            in_specs=[
                pl.BlockSpec((BRP, FP), lambda i: (0, 0)),
                pl.BlockSpec((FP, 3 * V), lambda i: (0, 0)),
                pl.BlockSpec((4 * BRP, JE), lambda i: (0, 0)),
                pl.BlockSpec((JE, V), lambda i: (0, 0)),
            ],
            out_specs=pl.BlockSpec((BRP, V), lambda i: (0, 0))),
    )(feat_rep, w_comb, aT_ext, wT_ext)


# ============================ JAX glue (tiny ops, all under jit) =============

def batch_rodrigues(rot_vecs):
    """(N,3) axis-angle -> (N,3,3) rotation matrices (matches smplx/torch)."""
    eps = 1e-8
    angle = jnp.linalg.norm(rot_vecs + eps, axis=1, keepdims=True)   # (N,1)
    rot_dir = rot_vecs / angle
    cos = jnp.cos(angle)[:, None]                                    # (N,1,1)
    sin = jnp.sin(angle)[:, None]
    rx, ry, rz = rot_dir[:, 0], rot_dir[:, 1], rot_dir[:, 2]
    zeros = jnp.zeros_like(rx)
    K = jnp.stack([zeros, -rz, ry, rz, zeros, -rx, -ry, rx, zeros],
                  axis=1).reshape(-1, 3, 3)
    ident = jnp.eye(3, dtype=rot_vecs.dtype)[None]
    return ident + sin * K + (1.0 - cos) * jnp.matmul(K, K)


def batch_rigid_transform(rot_mats, joints, parents):
    """Kinematic chain. rot_mats (B,J,3,3), joints (B,J,3), parents numpy (J,)."""
    # TODO(synk): 24-step sequential chain of (B,4,4) matmuls stays in plain JAX
    # (fused into the single jit region); it has no clean batched Pallas form.
    joints_e = joints[..., None]                                     # (B,J,3,1)
    rel = joints_e.at[:, 1:].add(-joints_e[:, parents[1:]])
    bottom = jnp.broadcast_to(
        jnp.array([0., 0., 0., 1.], dtype=rot_mats.dtype).reshape(1, 1, 1, 4),
        (rot_mats.shape[0], rot_mats.shape[1], 1, 4))
    transforms_mat = jnp.concatenate(
        [jnp.concatenate([rot_mats, rel], axis=3), bottom], axis=2)  # (B,J,4,4)
    chain = [transforms_mat[:, 0]]
    for i in range(1, parents.shape[0]):
        chain.append(jnp.matmul(chain[int(parents[i])], transforms_mat[:, i]))
    transforms = jnp.stack(chain, axis=1)
    posed_joints = transforms[:, :, :3, 3]
    joints_h = jnp.concatenate(
        [joints_e, jnp.zeros_like(joints_e[:, :, :1])], axis=2)      # (B,J,4,1)
    tj = jnp.matmul(transforms, joints_h)                            # (B,J,4,1)
    rel_transforms = transforms - jnp.concatenate(
        [jnp.zeros(transforms.shape[:3] + (3,), transforms.dtype), tj], axis=3)
    return posed_joints, rel_transforms


def prepare_model_buffers(v_template_single, shapedirs, posedirs, J_regressor,
                          weights):
    """One-time rearrangement of the constant model buffers (done at setup)."""
    # coordinate-major flattening: flat index f = k*V + v
    sd_cm = shapedirs.transpose(1, 0, 2).reshape(3 * V, NB).T                  # (NB, 3V)
    pd_cm = posedirs.reshape(P, V, 3).transpose(0, 2, 1).reshape(P, 3 * V)     # (P, 3V)
    vt_cm = v_template_single.T.reshape(1, 3 * V)                              # (1, 3V)
    # fused blend weights: [shapedirs; posedirs; v_template (ones feature); pad]
    w_comb = jnp.concatenate(
        [sd_cm, pd_cm, vt_cm, jnp.zeros((FP - F - 1, 3 * V), DT)], axis=0)     # (FP, 3V)
    # skinning weights^T with an extra all-ones row (trans) + zero padding rows
    wT_ext = jnp.concatenate(
        [weights.T, jnp.ones((1, V), DT), jnp.zeros((JE - J - 1, V), DT)],
        axis=0)                                                                # (JE, V)
    # joint regression folded onto the (tiny) shape basis: Jr = Jt + betas @ Js
    J_template = jnp.matmul(J_regressor, v_template_single)                    # (J, 3)
    J_shapedirs = jnp.einsum('jv,vkl->jkl', J_regressor, shapedirs)            # (J, 3, NB)
    return dict(w_comb=w_comb, wT_ext=wT_ext,
                J_template=J_template, J_shapedirs=J_shapedirs)


def body_model_forward(root_orient, pose_body, pose_hand, betas, trans,
                       buffers, parents):
    # full_pose = cat([root_orient, pose_body, pose_hand])  (model_type='smpl')
    full_pose = jnp.concatenate([root_orient, pose_body, pose_hand], axis=1)   # (B,72)
    rot_mats = batch_rodrigues(full_pose.reshape(-1, 3)).reshape(B, J, 3, 3)
    pose_feature = (rot_mats[:, 1:] - jnp.eye(3, dtype=DT)).reshape(B, P)

    # fused blend features: [betas, pose_feature, 1 (v_template), 0-pad]
    feat = jnp.concatenate(
        [betas, pose_feature, jnp.ones((B, 1), DT)], axis=1)                   # (B, F+1)
    feat = jnp.pad(feat, ((0, 0), (0, FP - (F + 1))))                          # (B, FP)
    # one row per (batch, output coordinate): row 3b+k = feat[b]  (MXU-free repeat)
    feat_rep = jnp.pad(jnp.repeat(feat, 3, axis=0),
                       ((0, BRP - 3 * B), (0, 0)))                             # (BRP, FP)

    # joint regression (only (B, 24, 3)) in plain JAX — algebraically identical
    # to J_regressor @ v_shaped since the shape blend is linear in betas.
    Jr = buffers['J_template'][None] + jnp.einsum(
        'bl,jkl->bjk', betas, buffers['J_shapedirs'])                          # (B,J,3)

    posed_joints, A = batch_rigid_transform(rot_mats, Jr, parents)             # A: (B,J,4,4)

    # pack per-joint affines for the skin matmul: row c*BRP + (3b+k), col j.
    aTc = jnp.transpose(A[:, :, :3, :], (3, 0, 2, 1)).reshape(4, 3 * B, J)     # (4,3B,J)
    aTc = jnp.pad(aTc, ((0, 0), (0, BRP - 3 * B), (0, 0)))                     # (4,BRP,J)
    aT_ext = jnp.zeros((4, BRP, JE), DT)
    aT_ext = aT_ext.at[:, :, :J].set(aTc)
    aT_ext = aT_ext.at[3, :3 * B, J].set(trans.reshape(3 * B))                 # trans column
    aT_ext = aT_ext.reshape(4 * BRP, JE)                                       # (4*BRP, JE)

    # --- single fused Pallas kernel: blend + skin + translation --------------
    out = run_fused_lbs(feat_rep, buffers['w_comb'], aT_ext, buffers['wT_ext'])  # (BRP, V)
    verts = out[:3 * B].reshape(B, 3, V).transpose(0, 2, 1)                    # (B, V, 3)

    Jtr = posed_joints + trans[:, None, :]
    return verts, Jtr, full_pose


# ============================ pure-JAX reference =============================

def lbs_reference(root_orient, pose_body, pose_hand, betas, trans,
                  v_template, shapedirs, posedirs, J_regressor, weights,
                  parents):
    full_pose = jnp.concatenate([root_orient, pose_body, pose_hand], axis=1)
    v_shaped = v_template[None] + jnp.einsum('bl,mkl->bmk', betas, shapedirs)
    Jr = jnp.einsum('jv,bvk->bjk', J_regressor, v_shaped)
    rot_mats = batch_rodrigues(full_pose.reshape(-1, 3)).reshape(B, J, 3, 3)
    pose_feature = (rot_mats[:, 1:] - jnp.eye(3, dtype=DT)).reshape(B, -1)
    pose_offsets = jnp.matmul(pose_feature, posedirs).reshape(B, V, 3)
    v_posed = v_shaped + pose_offsets
    posed_joints, A = batch_rigid_transform(rot_mats, Jr, parents)
    W = jnp.broadcast_to(weights[None], (B, V, J))
    T = jnp.matmul(W, A.reshape(B, J, 16)).reshape(B, V, 4, 4)
    vph = jnp.concatenate([v_posed, jnp.ones((B, V, 1), DT)], axis=2)
    v_homo = jnp.matmul(T, vph[..., None])
    verts = v_homo[:, :, :3, 0]
    return verts + trans[:, None], posed_joints + trans[:, None]


# ================================== main =====================================

if __name__ == "__main__":
    key = jax.random.PRNGKey(0)
    ks = jax.random.split(key, 10)

    # deterministic synthetic SMPL buffers (shapes as in BodyModel.__init__)
    v_template_single = jax.random.normal(ks[0], (V, 3), DT) * 0.1     # (V,3)
    shapedirs = jax.random.normal(ks[1], (V, 3, NB), DT) * 0.01
    posedirs_raw = jax.random.normal(ks[2], (V, 3, P), DT) * 0.01
    posedirs = posedirs_raw.reshape(V * 3, P).T                        # module buffer: (207, V*3)
    J_regressor = jax.nn.softmax(jax.random.normal(ks[3], (J, V), DT), axis=1)
    weights = jax.nn.softmax(jax.random.normal(ks[4], (V, J), DT) * 2.0, axis=1)
    parents = np.array([-1, 0, 0, 0, 1, 2, 3, 4, 5, 6, 7, 8, 9, 9, 9,
                        12, 13, 14, 16, 17, 18, 19, 20, 21], dtype=np.int32)

    buffers = prepare_model_buffers(v_template_single, shapedirs, posedirs,
                                    J_regressor, weights)

    # pose / shape / translation inputs (model_type='smpl': hand pose = 2*3)
    root_orient = jax.random.normal(ks[5], (B, 3), DT) * 0.3
    pose_body = jax.random.normal(ks[6], (B, 63), DT) * 0.3
    pose_hand = jax.random.normal(ks[7], (B, 6), DT) * 0.3
    betas = jax.random.normal(ks[8], (B, NB), DT)
    trans = jax.random.normal(ks[9], (B, 3), DT) * 0.1

    # One jitted region: Rodrigues + kinematic chain + packing + fused kernel.
    forward_jit = jax.jit(functools.partial(body_model_forward, parents=parents))

    verts, Jtr, full_pose = forward_jit(root_orient, pose_body, pose_hand,
                                        betas, trans, buffers)
    jax.block_until_ready((verts, Jtr, full_pose))

    verts_ref, Jtr_ref = lbs_reference(
        root_orient, pose_body, pose_hand, betas, trans,
        v_template_single, shapedirs, posedirs, J_regressor, weights, parents)

    assert verts.shape == (B, V, 3) and Jtr.shape == (B, J, 3)
    assert full_pose.shape == (B, 72)
    assert np.allclose(np.asarray(verts), np.asarray(verts_ref), rtol=1e-3, atol=1e-3)
    assert np.allclose(np.asarray(Jtr), np.asarray(Jtr_ref), rtol=1e-3, atol=1e-3)

    print("KERNEL_OK")
</pallas_src>

<mosaic_0001>
module attributes {stable_mosaic.version = 11 : i64} {
  func.func @fused_lbs_kernel(%arg0: i32, %arg1: memref<8x224xf32, #tpu.memory_space<vmem>>, %arg2: memref<224x768xf32, #tpu.memory_space<vmem>>, %arg3: memref<32x32xf32, #tpu.memory_space<vmem>>, %arg4: memref<32x256xf32, #tpu.memory_space<vmem>>, %arg5: memref<8x256xf32, #tpu.memory_space<vmem>>) attributes {dimension_semantics = [#tpu.dimension_semantics<arbitrary>], iteration_bounds = array<i64: 1>, scalar_prefetch = 0 : i64, scratch_operands = 0 : i64, tpu.core_type = #tpu.core_type<tc>, window_params = [{pipeline_mode = #tpu.pipeline_mode<synchronous>, transform_indices = @transform_0, window_bounds = array<i64: 8, 224>}, {pipeline_mode = #tpu.pipeline_mode<synchronous>, transform_indices = @transform_1, window_bounds = array<i64: 224, 768>}, {pipeline_mode = #tpu.pipeline_mode<synchronous>, transform_indices = @transform_2, window_bounds = array<i64: 32, 32>}, {pipeline_mode = #tpu.pipeline_mode<synchronous>, transform_indices = @transform_3, window_bounds = array<i64: 32, 256>}, {pipeline_mode = #tpu.pipeline_mode<synchronous>, transform_indices = @transform_4, window_bounds = array<i64: 8, 256>}]} {
    %c0 = arith.constant 0 : index
    %c0_0 = arith.constant 0 : index
    %0 = vector.load %arg1[%c0, %c0_0] : memref<8x224xf32, #tpu.memory_space<vmem>>, vector<8x224xf32>
    %c0_1 = arith.constant 0 : index
    %c0_2 = arith.constant 0 : index
    %1 = vector.load %arg2[%c0_1, %c0_2] : memref<224x768xf32, #tpu.memory_space<vmem>>, vector<224x768xf32>
    %cst = arith.constant dense<0.000000e+00> : vector<8x768xf32>
    %2 = tpu.matmul %0, %1, %cst {dimension_numbers = #tpu.dot_dimension_numbers<[1], [0], [0], [1], [0, 0, 1, 1], [], []>} : vector<8x224xf32>, vector<224x768xf32>, vector<8x768xf32> -> vector<8x768xf32>
    %c0_3 = arith.constant 0 : index
    %c0_4 = arith.constant 0 : index
    %3 = vector.load %arg3[%c0_3, %c0_4] : memref<32x32xf32, #tpu.memory_space<vmem>>, vector<32x32xf32>
    %c0_5 = arith.constant 0 : index
    %c0_6 = arith.constant 0 : index
    %4 = vector.load %arg4[%c0_5, %c0_6] : memref<32x256xf32, #tpu.memory_space<vmem>>, vector<32x256xf32>
    %cst_7 = arith.constant dense<0.000000e+00> : vector<32x256xf32>
    %5 = tpu.matmul %3, %4, %cst_7 {dimension_numbers = #tpu.dot_dimension_numbers<[1], [0], [0], [1], [0, 0, 1, 1], [], []>} : vector<32x32xf32>, vector<32x256xf32>, vector<32x256xf32> -> vector<32x256xf32>
    %6 = vector.extract_strided_slice %5 {offsets = [0, 0], sizes = [8, 256], strides = [1, 1]} : vector<32x256xf32> to vector<8x256xf32>
    %7 = vector.extract_strided_slice %2 {offsets = [0, 0], sizes = [8, 256], strides = [1, 1]} : vector<8x768xf32> to vector<8x256xf32>
    %8 = arith.mulf %6, %7 : vector<8x256xf32>
    %9 = vector.extract_strided_slice %5 {offsets = [8, 0], sizes = [8, 256], strides = [1, 1]} : vector<32x256xf32> to vector<8x256xf32>
    %10 = vector.extract_strided_slice %2 {offsets = [0, 256], sizes = [8, 256], strides = [1, 1]} : vector<8x768xf32> to vector<8x256xf32>
    %11 = arith.mulf %9, %10 : vector<8x256xf32>
    %12 = arith.addf %8, %11 : vector<8x256xf32>
    %13 = vector.extract_strided_slice %5 {offsets = [16, 0], sizes = [8, 256], strides = [1, 1]} : vector<32x256xf32> to vector<8x256xf32>
    %14 = vector.extract_strided_slice %2 {offsets = [0, 512], sizes = [8, 256], strides = [1, 1]} : vector<8x768xf32> to vector<8x256xf32>
    %15 = arith.mulf %13, %14 : vector<8x256xf32>
    %16 = arith.addf %12, %15 : vector<8x256xf32>
    %17 = vector.extract_strided_slice %5 {offsets = [24, 0], sizes = [8, 256], strides = [1, 1]} : vector<32x256xf32> to vector<8x256xf32>
    %18 = arith.addf %16, %17 : vector<8x256xf32>
    %c0_8 = arith.constant 0 : index
    %c0_9 = arith.constant 0 : index
    %19 = vector.load %arg5[%c0_8, %c0_9] : memref<8x256xf32, #tpu.memory_space<vmem>>, vector<8x256xf32>
    tpu.vector_store %arg5[%c0_8, %c0_9], %18 {strides = array<i32>} : memref<8x256xf32, #tpu.memory_space<vmem>>, vector<8x256xf32>,
    return
  }
  func.func @transform_0(%arg0: i32) -> (i32, i32) {
    %c0_i32 = arith.constant 0 : i32
    %c0_i32_0 = arith.constant 0 : i32
    %c0_i32_1 = arith.constant 0 : i32
    return %c0_i32, %c0_i32_0 : i32, i32
  }
  func.func @transform_1(%arg0: i32) -> (i32, i32) {
    %c0_i32 = arith.constant 0 : i32
    %c0_i32_0 = arith.constant 0 : i32
    %c0_i32_1 = arith.constant 0 : i32
    return %c0_i32, %c0_i32_0 : i32, i32
  }
  func.func @transform_2(%arg0: i32) -> (i32, i32) {
    %c0_i32 = arith.constant 0 : i32
    %c0_i32_0 = arith.constant 0 : i32
    %c0_i32_1 = arith.constant 0 : i32
    return %c0_i32, %c0_i32_0 : i32, i32
  }
  func.func @transform_3(%arg0: i32) -> (i32, i32) {
    %c0_i32 = arith.constant 0 : i32
    %c0_i32_0 = arith.constant 0 : i32
    %c0_i32_1 = arith.constant 0 : i32
    return %c0_i32, %c0_i32_0 : i32, i32
  }
  func.func @transform_4(%arg0: i32) -> (i32, i32) {
    %c0_i32 = arith.constant 0 : i32
    %c0_i32_0 = arith.constant 0 : i32
    %c0_i32_1 = arith.constant 0 : i32
    return %c0_i32, %c0_i32_0 : i32, i32
  }
}

</mosaic_0001>

<bundles_post_ra>
// kernel: body_model_forward.1
= control target key start
LH: loop header
LB: loop body
LE: loop exit
PB: predicated region body
PF: predicated region fallthrough
CT: control target
= control target key end

     0   :  { %vm187_vm0 = vcmask 785408   ;;  %vm416_vm1 = vcmask 261120   ;;  %s1315_s1 = inlined_call_operand.vmem [shape: f32[224,768], index: 1, kind: input, shape index: {}]   ;;  %s1316_s0 = inlined_call_operand.vmem [shape: f32[8,224], index: 0, kind: input, shape index: {}]   ;;  %s1317_s3 = inlined_call_operand.vmem [shape: f32[32,256], index: 3, kind: input, shape index: {}]   ;;  %s1318_s2 = inlined_call_operand.vmem [shape: f32[32,32], index: 2, kind: input, shape index: {}]   ;;  %s1319_s4 = inlined_call_operand.vmem [shape: f32[8,256], index: 4, kind: output, shape index: {}]  }
   0x1   :  { %v20_v0 = vld [vmem:[%s1315_s1 + $0x8] sm:$0xff]  ;;  %v26_v1 = vld [vmem:[%s1315_s1 + $0x38] sm:$0xff]  ;;  %v19_v5 = vld [vmem:[%s1315_s1] sm:$0xff] }
   0x2   :  { %v22_v2 = vld [vmem:[%s1315_s1 + $0x18] sm:$0xff]  ;;  %v543_v3 = vpack.c.bf16 %v26_v1, %v20_v0  ;;  %v28_v4 = vld [vmem:[%s1315_s1 + $0x48] sm:$0xff]  ;;  %v25_v6 = vld [vmem:[%s1315_s1 + $0x30] sm:$0xff] }
   0x3   :  { %v599_v7 = vpack.c.bf16 %v28_v4, %v22_v2  ;;  %v545_v8 = vpack.c.bf16 %v25_v6, %v19_v5  ;;  %v21_v9 = vld [vmem:[%s1315_s1 + $0x10] sm:$0xff]  ;;  %v27_v10 = vld [vmem:[%s1315_s1 + $0x40] sm:$0xff]  ;;  %v32_v11 = vld [vmem:[%s1315_s1 + $0x68] sm:$0xff] }
   0x4   :  { %544 = vmatprep.subr.bf16.mxu0 %v543_v3  ;;  %v601_v12 = vpack.c.bf16 %v27_v10, %v21_v9  ;;  %v38_v13 = vld [vmem:[%s1315_s1 + $0x98] sm:$0xff]  ;;  %v40_v15 = vld [vmem:[%s1315_s1 + $0xa8] sm:$0xff]  ;;  %v31_v18 = vld [vmem:[%s1315_s1 + $0x60] sm:$0xff] }
   0x5   :  { %v34_v14 = vld [vmem:[%s1315_s1 + $0x78] sm:$0xff]  ;;  %600 = vmatprep.subr.bf16.mxu1 %v599_v7  ;;  %546 = vmatpush1.bf16.msra.mxu0 %v545_v8  ;;  %v547_v16 = vpack.c.bf16 %v38_v13, %v32_v11  ;;  %v37_v19 = vld [vmem:[%s1315_s1 + $0x90] sm:$0xff]  ;;  %v39_v22 = vld [vmem:[%s1315_s1 + $0xa0] sm:$0xff] }
   0x6   :  { %v603_v17 = vpack.c.bf16 %v40_v15, %v34_v14  ;;  %v33_v20 = vld [vmem:[%s1315_s1 + $0x70] sm:$0xff]  ;;  %602 = vmatpush1.bf16.msra.mxu1 %v601_v12  ;;  %v549_v21 = vpack.c.bf16 %v37_v19, %v31_v18  ;;  %v44_v23 = vld [vmem:[%s1315_s1 + $0xc8] sm:$0xff]  ;;  %v50_v24 = vld [vmem:[%s1315_s1 + $0xf8] sm:$0xff] }
   0x7   :  { %548 = vmatprep.subr.bf16.mxu0 %v547_v16  ;;  %v605_v25 = vpack.c.bf16 %v39_v22, %v33_v20  ;;  %v551_v26 = vpack.c.bf16 %v50_v24, %v44_v23  ;;  %v46_v27 = vld [vmem:[%s1315_s1 + $0xd8] sm:$0xff]  ;;  %v52_v28 = vld [vmem:[%s1315_s1 + $0x108] sm:$0xff]  ;;  %v43_v29 = vld [vmem:[%s1315_s1 + $0xc0] sm:$0xff] }
   0x8   :  { %604 = vmatprep.subr.bf16.mxu1 %v603_v17  ;;  %v607_v30 = vpack.c.bf16 %v52_v28, %v46_v27  ;;  %v49_v31 = vld [vmem:[%s1315_s1 + $0xf0] sm:$0xff]  ;;  %v51_v33 = vld [vmem:[%s1315_s1 + $0x100] sm:$0xff]  ;;  %v56_v35 = vld [vmem:[%s1315_s1 + $0x128] sm:$0xff] }
   0x9   :  { %v45_v32 = vld [vmem:[%s1315_s1 + $0xd0] sm:$0xff]  ;;  %550 = vmatpush1.bf16.msra.mxu0 %v549_v21  ;;  %v553_v34 = vpack.c.bf16 %v49_v31, %v43_v29  ;;  %v62_v36 = vld [vmem:[%s1315_s1 + $0x158] sm:$0xff]  ;;  %v64_v40 = vld [vmem:[%s1315_s1 + $0x168] sm:$0xff] }
   0xa   :  { %v58_v37 = vld [vmem:[%s1315_s1 + $0x138] sm:$0xff]  ;;  %606 = vmatpush1.bf16.msra.mxu1 %v605_v25  ;;  %552 = vmatprep.subr.bf16.mxu0 %v551_v26  ;;  %v609_v38 = vpack.c.bf16 %v51_v33, %v45_v32  ;;  %v555_v39 = vpack.c.bf16 %v62_v36, %v56_v35  ;;  %v55_v41 = vld [vmem:[%s1315_s1 + $0x120] sm:$0xff]  ;;  %v61_v42 = vld [vmem:[%s1315_s1 + $0x150] sm:$0xff] }
   0xb   :  { %608 = vmatprep.subr.bf16.mxu1 %v607_v30  ;;  %v611_v43 = vpack.c.bf16 %v64_v40, %v58_v37  ;;  %v57_v44 = vld [vmem:[%s1315_s1 + $0x130] sm:$0xff]  ;;  %v63_v45 = vld [vmem:[%s1315_s1 + $0x160] sm:$0xff]  ;;  %v68_v46 = vld [vmem:[%s1315_s1 + $0x188] sm:$0xff]  ;;  %v557_v50 = vpack.c.bf16 %v61_v42, %v55_v41 }
   0xc   :  { %v74_v47 = vld [vmem:[%s1315_s1 + $0x1b8] sm:$0xff]  ;;  %v76_v49 = vld [vmem:[%s1315_s1 + $0x1c8] sm:$0xff]  ;;  %v613_v51 = vpack.c.bf16 %v63_v45, %v57_v44  ;;  %v67_v53 = vld [vmem:[%s1315_s1 + $0x180] sm:$0xff] }
   0xd   :  { %v70_v48 = vld [vmem:[%s1315_s1 + $0x198] sm:$0xff]  ;;  %554 = vmatpush1.bf16.msra.mxu0 %v553_v34  ;;  %v559_v52 = vpack.c.bf16 %v74_v47, %v68_v46  ;;  %v73_v54 = vld [vmem:[%s1315_s1 + $0x1b0] sm:$0xff]  ;;  %v75_v57 = vld [vmem:[%s1315_s1 + $0x1c0] sm:$0xff] }
   0xe   :  { %610 = vmatpush1.bf16.msra.mxu1 %v609_v38  ;;  %556 = vmatprep.subr.bf16.mxu0 %v555_v39  ;;  %v69_v55 = vld [vmem:[%s1315_s1 + $0x190] sm:$0xff]  ;;  %v615_v56 = vpack.c.bf16 %v76_v49, %v70_v48  ;;  %v80_v58 = vld [vmem:[%s1315_s1 + $0x1e8] sm:$0xff]  ;;  %v86_v59 = vld [vmem:[%s1315_s1 + $0x218] sm:$0xff]  ;;  %v561_v62 = vpack.c.bf16 %v73_v54, %v67_v53 }
   0xf   :  { %612 = vmatprep.subr.bf16.mxu1 %v611_v43  ;;  %v82_v60 = vld [vmem:[%s1315_s1 + $0x1f8] sm:$0xff]  ;;  %v88_v61 = vld [vmem:[%s1315_s1 + $0x228] sm:$0xff]  ;;  %v617_v63 = vpack.c.bf16 %v75_v57, %v69_v55  ;;  %v563_v0 = vpack.c.bf16 %v86_v59, %v80_v58  ;;  %v79_v1 = vld [vmem:[%s1315_s1 + $0x1e0] sm:$0xff] }
  0x10   :  { %v85_v2 = vld [vmem:[%s1315_s1 + $0x210] sm:$0xff]  ;;  %v619_v4 = vpack.c.bf16 %v88_v61, %v82_v60  ;;  %v87_v5 = vld [vmem:[%s1315_s1 + $0x220] sm:$0xff]  ;;  %v92_v6 = vld [vmem:[%s1315_s1 + $0x248] sm:$0xff] }
  0x11   :  { %558 = vmatpush1.bf16.msra.mxu0 %v557_v50  ;;  %v81_v3 = vld [vmem:[%s1315_s1 + $0x1f0] sm:$0xff]  ;;  %v98_v7 = vld [vmem:[%s1315_s1 + $0x278] sm:$0xff]  ;;  %v100_v9 = vld [vmem:[%s1315_s1 + $0x288] sm:$0xff]  ;;  %v565_v10 = vpack.c.bf16 %v85_v2, %v79_v1 }
  0x12   :  { %614 = vmatpush1.bf16.msra.mxu1 %v613_v51  ;;  %560 = vmatprep.subr.bf16.mxu0 %v559_v52  ;;  %v94_v8 = vld [vmem:[%s1315_s1 + $0x258] sm:$0xff]  ;;  %v621_v11 = vpack.c.bf16 %v87_v5, %v81_v3  ;;  %v567_v12 = vpack.c.bf16 %v98_v7, %v92_v6  ;;  %v91_v13 = vld [vmem:[%s1315_s1 + $0x240] sm:$0xff]  ;;  %v97_v14 = vld [vmem:[%s1315_s1 + $0x270] sm:$0xff] }
  0x13   :  { %616 = vmatprep.subr.bf16.mxu1 %v615_v56  ;;  %v93_v15 = vld [vmem:[%s1315_s1 + $0x250] sm:$0xff]  ;;  %v623_v16 = vpack.c.bf16 %v100_v9, %v94_v8  ;;  %v99_v17 = vld [vmem:[%s1315_s1 + $0x280] sm:$0xff]  ;;  %v104_v18 = vld [vmem:[%s1315_s1 + $0x2a8] sm:$0xff]  ;;  %v569_v22 = vpack.c.bf16 %v97_v14, %v91_v13 }
  0x14   :  { %v110_v19 = vld [vmem:[%s1315_s1 + $0x2d8] sm:$0xff]  ;;  %v112_v21 = vld [vmem:[%s1315_s1 + $0x2e8] sm:$0xff]  ;;  %v625_v23 = vpack.c.bf16 %v99_v17, %v93_v15  ;;  %v103_v25 = vld [vmem:[%s1315_s1 + $0x2a0] sm:$0xff] }
  0x15   :  { %562 = vmatpush1.bf16.msra.mxu0 %v561_v62  ;;  %v106_v20 = vld [vmem:[%s1315_s1 + $0x2b8] sm:$0xff]  ;;  %v571_v24 = vpack.c.bf16 %v110_v19, %v104_v18  ;;  %v109_v26 = vld [vmem:[%s1315_s1 + $0x2d0] sm:$0xff]  ;;  %v111_v29 = vld [vmem:[%s1315_s1 + $0x2e0] sm:$0xff] }
  0x16   :  { %618 = vmatpush1.bf16.msra.mxu1 %v617_v63  ;;  %564 = vmatprep.subr.bf16.mxu0 %v563_v0  ;;  %v105_v27 = vld [vmem:[%s1315_s1 + $0x2b0] sm:$0xff]  ;;  %v627_v28 = vpack.c.bf16 %v112_v21, %v106_v20  ;;  %v116_v30 = vld [vmem:[%s1315_s1 + $0x308] sm:$0xff]  ;;  %v122_v31 = vld [vmem:[%s1315_s1 + $0x338] sm:$0xff]  ;;  %v573_v34 = vpack.c.bf16 %v109_v26, %v103_v25 }
  0x17   :  { %620 = vmatprep.subr.bf16.mxu1 %v619_v4  ;;  %v118_v32 = vld [vmem:[%s1315_s1 + $0x318] sm:$0xff]  ;;  %v124_v33 = vld [vmem:[%s1315_s1 + $0x348] sm:$0xff]  ;;  %v629_v35 = vpack.c.bf16 %v111_v29, %v105_v27  ;;  %v575_v36 = vpack.c.bf16 %v122_v31, %v116_v30  ;;  %v115_v37 = vld [vmem:[%s1315_s1 + $0x300] sm:$0xff] }
  0x18   :  { %v121_v38 = vld [vmem:[%s1315_s1 + $0x330] sm:$0xff]  ;;  %v631_v40 = vpack.c.bf16 %v124_v33, %v118_v32  ;;  %v123_v41 = vld [vmem:[%s1315_s1 + $0x340] sm:$0xff]  ;;  %v128_v42 = vld [vmem:[%s1315_s1 + $0x368] sm:$0xff] }
  0x19   :  { %566 = vmatpush1.bf16.msra.mxu0 %v565_v10  ;;  %v117_v39 = vld [vmem:[%s1315_s1 + $0x310] sm:$0xff]  ;;  %v134_v43 = vld [vmem:[%s1315_s1 + $0x398] sm:$0xff]  ;;  %v136_v45 = vld [vmem:[%s1315_s1 + $0x3a8] sm:$0xff]  ;;  %v577_v46 = vpack.c.bf16 %v121_v38, %v115_v37 }
  0x1a   :  { %622 = vmatpush1.bf16.msra.mxu1 %v621_v11  ;;  %568 = vmatprep.subr.bf16.mxu0 %v567_v12  ;;  %v130_v44 = vld [vmem:[%s1315_s1 + $0x378] sm:$0xff]  ;;  %v633_v47 = vpack.c.bf16 %v123_v41, %v117_v39  ;;  %v579_v48 = vpack.c.bf16 %v134_v43, %v128_v42  ;;  %v127_v49 = vld [vmem:[%s1315_s1 + $0x360] sm:$0xff]  ;;  %v133_v50 = vld [vmem:[%s1315_s1 + $0x390] sm:$0xff] }
  0x1b   :  { %624 = vmatprep.subr.bf16.mxu1 %v623_v16  ;;  %v129_v51 = vld [vmem:[%s1315_s1 + $0x370] sm:$0xff]  ;;  %v635_v52 = vpack.c.bf16 %v136_v45, %v130_v44  ;;  %v135_v53 = vld [vmem:[%s1315_s1 + $0x3a0] sm:$0xff]  ;;  %v140_v54 = vld [vmem:[%s1315_s1 + $0x3c8] sm:$0xff]  ;;  %v581_v58 = vpack.c.bf16 %v133_v50, %v127_v49 }
  0x1c   :  { %v146_v55 = vld [vmem:[%s1315_s1 + $0x3f8] sm:$0xff]  ;;  %v148_v57 = vld [vmem:[%s1315_s1 + $0x408] sm:$0xff]  ;;  %v139_v59 = vld [vmem:[%s1315_s1 + $0x3c0] sm:$0xff]  ;;  %v637_v60 = vpack.c.bf16 %v135_v53, %v129_v51 }
  0x1d   :  { %570 = vmatpush1.bf16.msra.mxu0 %v569_v22  ;;  %v142_v56 = vld [vmem:[%s1315_s1 + $0x3d8] sm:$0xff]  ;;  %v583_v61 = vpack.c.bf16 %v146_v55, %v140_v54  ;;  %v145_v62 = vld [vmem:[%s1315_s1 + $0x3f0] sm:$0xff]  ;;  %v1010_v0 = vld [vmem:[%s1316_s0 + $0x8] sm:$0xff] }
  0x1e   :  { %626 = vmatpush1.bf16.msra.mxu1 %v625_v23  ;;  %572 = vmatprep.subr.bf16.mxu0 %v571_v24  ;;  %v141_v63 = vld [vmem:[%s1315_s1 + $0x3d0] sm:$0xff]  ;;  %v639_v1 = vpack.c.bf16 %v148_v57, %v142_v56  ;;  %v147_v2 = vld [vmem:[%s1315_s1 + $0x400] sm:$0xff]  ;;  %v152_v3 = vld [vmem:[%s1315_s1 + $0x428] sm:$0xff]  ;;  %v585_v7 = vpack.c.bf16 %v145_v62, %v139_v59 }
  0x1f   :  { %628 = vmatprep.subr.bf16.mxu1 %v627_v28  ;;  %v158_v4 = vld [vmem:[%s1315_s1 + $0x458] sm:$0xff]  ;;  %536 = vmatprep.mubr.msk.f32.mxu0 %vm187_vm0, %v1010_v0  ;;  %v160_v6 = vld [vmem:[%s1315_s1 + $0x468] sm:$0xff]  ;;  %v641_v8 = vpack.c.bf16 %v147_v2, %v141_v63  ;;  %v151_v10 = vld [vmem:[%s1315_s1 + $0x420] sm:$0xff] }
  0x20   :  { %v154_v5 = vld [vmem:[%s1315_s1 + $0x438] sm:$0xff]  ;;  %537 = vmatprep.mubr.msk.f32.mxu1 %vm187_vm0, %v1010_v0  ;;  %v587_v9 = vpack.c.bf16 %v158_v4, %v152_v3  ;;  %v157_v11 = vld [vmem:[%s1315_s1 + $0x450] sm:$0xff]  ;;  %v159_v14 = vld [vmem:[%s1315_s1 + $0x460] sm:$0xff] }
  0x21   :  { %574 = vmatpush1.bf16.msra.mxu0 %v573_v34  ;;  %v153_v12 = vld [vmem:[%s1315_s1 + $0x430] sm:$0xff]  ;;  %v643_v13 = vpack.c.bf16 %v160_v6, %v154_v5  ;;  %v164_v15 = vld [vmem:[%s1315_s1 + $0x488] sm:$0xff]  ;;  %v170_v16 = vld [vmem:[%s1315_s1 + $0x4b8] sm:$0xff]  ;;  %v589_v19 = vpack.c.bf16 %v157_v11, %v151_v10 }
  0x22   :  { %630 = vmatpush1.bf16.msra.mxu1 %v629_v35  ;;  %576 = vmatprep.subr.bf16.mxu0 %v575_v36  ;;  %v166_v17 = vld [vmem:[%s1315_s1 + $0x498] sm:$0xff]  ;;  %v172_v18 = vld [vmem:[%s1315_s1 + $0x4c8] sm:$0xff]  ;;  %v645_v20 = vpack.c.bf16 %v159_v14, %v153_v12  ;;  %v591_v21 = vpack.c.bf16 %v170_v16, %v164_v15  ;;  %v163_v22 = vld [vmem:[%s1315_s1 + $0x480] sm:$0xff] }
  0x23   :  { %632 = vmatprep.subr.bf16.mxu1 %v631_v40  ;;  %v169_v23 = vld [vmem:[%s1315_s1 + $0x4b0] sm:$0xff]  ;;  %v647_v25 = vpack.c.bf16 %v172_v18, %v166_v17  ;;  %v171_v26 = vld [vmem:[%s1315_s1 + $0x4c0] sm:$0xff]  ;;  %v176_v27 = vld [vmem:[%s1315_s1 + $0x4e8] sm:$0xff] }
  0x24   :  { %v165_v24 = vld [vmem:[%s1315_s1 + $0x490] sm:$0xff]  ;;  %v182_v28 = vld [vmem:[%s1315_s1 + $0x518] sm:$0xff]  ;;  %v184_v30 = vld [vmem:[%s1315_s1 + $0x528] sm:$0xff]  ;;  %v593_v31 = vpack.c.bf16 %v169_v23, %v163_v22 }
  0x25   :  { %578 = vmatpush1.bf16.msra.mxu0 %v577_v46  ;;  %v178_v29 = vld [vmem:[%s1315_s1 + $0x4f8] sm:$0xff]  ;;  %v649_v32 = vpack.c.bf16 %v171_v26, %v165_v24  ;;  %v595_v33 = vpack.c.bf16 %v182_v28, %v176_v27  ;;  %v175_v34 = vld [vmem:[%s1315_s1 + $0x4e0] sm:$0xff]  ;;  %v181_v35 = vld [vmem:[%s1315_s1 + $0x510] sm:$0xff] }
  0x26   :  { %634 = vmatpush1.bf16.msra.mxu1 %v633_v47  ;;  %580 = vmatprep.subr.bf16.mxu0 %v579_v48  ;;  %v177_v36 = vld [vmem:[%s1315_s1 + $0x4f0] sm:$0xff]  ;;  %v651_v37 = vpack.c.bf16 %v184_v30, %v178_v29  ;;  %v183_v38 = vld [vmem:[%s1315_s1 + $0x520] sm:$0xff]  ;;  %v24_v39 = vld [vmem:[%s1315_s1 + $0x28] sm:$0xff]  ;;  %v597_v43 = vpack.c.bf16 %v181_v35, %v175_v34 }
  0x27   :  { %636 = vmatprep.subr.bf16.mxu1 %v635_v52  ;;  %v30_v40 = vld [vmem:[%s1315_s1 + $0x58] sm:$0xff]  ;;  %v409_v41 = vld [vmem:[%s1317_s3 + $0x8] sm:$0xff]  ;;  %v653_v44 = vpack.c.bf16 %v183_v38, %v177_v36  ;;  %v23_v46 = vld [vmem:[%s1315_s1 + $0x20] sm:$0xff] }
  0x28   :  { %v411_v42 = vld [vmem:[%s1317_s3 + $0x18] sm:$0xff]  ;;  %v655_v45 = vpack.c.bf16 %v30_v40, %v24_v39  ;;  %v29_v47 = vld [vmem:[%s1315_s1 + $0x50] sm:$0xff]  ;;  %v408_v48 = vld [vmem:[%s1317_s3] sm:$0xff] }
  0x29   :  { %582 = vmatpush1.bf16.msra.mxu0 %v581_v58  ;;  %v711_v49 = vpack.c.bf16 %v411_v42, %v409_v41  ;;  %v410_v50 = vld [vmem:[%s1317_s3 + $0x10] sm:$0xff]  ;;  %v36_v51 = vld [vmem:[%s1315_s1 + $0x88] sm:$0xff]  ;;  %v42_v52 = vld [vmem:[%s1315_s1 + $0xb8] sm:$0xff]  ;;  %v657_v56 = vpack.c.bf16 %v29_v47, %v23_v46 }
  0x2a   :  { %638 = vmatpush1.bf16.msra.mxu1 %v637_v60  ;;  %584 = vmatprep.subr.bf16.mxu0 %v583_v61  ;;  %v413_v53 = vld [vmem:[%s1317_s3 + $0x28] sm:$0xff]  ;;  %v415_v54 = vld [vmem:[%s1317_s3 + $0x38] sm:$0xff]  ;;  %v1130_v55 = vld [vmem:[%s1316_s0] sm:$0xff]  ;;  %v713_v57 = vpack.c.bf16 %v410_v50, %v408_v48  ;;  %v659_v58 = vpack.c.bf16 %v42_v52, %v36_v51 }
  0x2b   :  { %640 = vmatprep.subr.bf16.mxu1 %v639_v1  ;;  %v35_v59 = vld [vmem:[%s1315_s1 + $0x80] sm:$0xff]  ;;  %v41_v60 = vld [vmem:[%s1315_s1 + $0xb0] sm:$0xff]  ;;  %v715_v62 = vpack.c.bf16 %v415_v54, %v413_v53  ;;  %v48_v1 = vld [vmem:[%s1315_s1 + $0xe8] sm:$0xff] }
  0x2c   :  { %v412_v61 = vld [vmem:[%s1317_s3 + $0x20] sm:$0xff]  ;;  %v414_v63 = vld [vmem:[%s1317_s3 + $0x30] sm:$0xff]  ;;  %v54_v2 = vld [vmem:[%s1315_s1 + $0x118] sm:$0xff]  ;;  %v661_v3 = vpack.c.bf16 %v41_v60, %v35_v59 }
  0x2d   :  { %586 = vmatpush1.bf16.msra.mxu0 %v585_v7  ;;  %v717_v4 = vpack.c.bf16 %v414_v63, %v412_v61  ;;  %v663_v5 = vpack.c.bf16 %v54_v2, %v48_v1  ;;  %v47_v6 = vld [vmem:[%s1315_s1 + $0xe0] sm:$0xff]  ;;  %v53_v7 = vld [vmem:[%s1315_s1 + $0x110] sm:$0xff]  ;;  %v66_v10 = vld [vmem:[%s1315_s1 + $0x178] sm:$0xff] }
  0x2e   :  { %642 = vmatpush1.bf16.msra.mxu1 %v641_v8  ;;  %588 = vmatprep.subr.bf16.mxu0 %v587_v9  ;;  %v720_v8 = vmov 0.0   ;;  %v60_v9 = vld [vmem:[%s1315_s1 + $0x148] sm:$0xff]  ;;  %v665_v11 = vpack.c.bf16 %v53_v7, %v47_v6  ;;  %v404_v12 = vld [vmem:[%s1318_s2] sm:$0xff]  ;;  %v65_v15 = vld [vmem:[%s1315_s1 + $0x170] sm:$0xff] }
  0x2f   :  { %644 = vmatprep.subr.bf16.mxu1 %v643_v13  ;;  %v667_v13 = vpack.c.bf16 %v66_v10, %v60_v9  ;;  %v59_v14 = vld [vmem:[%s1315_s1 + $0x140] sm:$0xff]  ;;  %v78_v16 = vld [vmem:[%s1315_s1 + $0x1d8] sm:$0xff]  ;;  %v405_v18 = vld [vmem:[%s1318_s2 + $0x8] sm:$0xff] }
  0x30   :  { %v669_v17 = vpack.c.bf16 %v65_v15, %v59_v14  ;;  %v84_v22 = vld [vmem:[%s1315_s1 + $0x208] sm:$0xff]  ;;  %v90_v23 = vld [vmem:[%s1315_s1 + $0x238] sm:$0xff]  ;;  %v83_v26 = vld [vmem:[%s1315_s1 + $0x200] sm:$0xff] }
  0x31   :  { %590 = vmatpush1.bf16.msra.mxu0 %v589_v19  ;;  %v89_v27 = vld [vmem:[%s1315_s1 + $0x230] sm:$0xff]  ;;  %v96_v29 = vld [vmem:[%s1315_s1 + $0x268] sm:$0xff]  ;;  %v102_v30 = vld [vmem:[%s1315_s1 + $0x298] sm:$0xff] }
  0x32   :  { %646 = vmatpush1.bf16.msra.mxu1 %v645_v20  ;;  %592 = vmatprep.subr.bf16.mxu0 %v591_v21  ;;  %v71_v20 = vld [vmem:[%s1315_s1 + $0x1a0] sm:$0xff]  ;;  %v77_v21 = vld [vmem:[%s1315_s1 + $0x1d0] sm:$0xff]  ;;  %v407_v35 = vld [vmem:[%s1318_s2 + $0x18] sm:$0xff] }
  0x33   :  { %648 = vmatprep.subr.bf16.mxu1 %v647_v25  ;;  %v673_v24 = vpack.c.bf16 %v77_v21, %v71_v20  ;;  %v675_v25 = vpack.c.bf16 %v90_v23, %v84_v22  ;;  %v406_v28 = vld [vmem:[%s1318_s2 + $0x10] sm:$0xff]  ;;  %v108_v36 = vld [vmem:[%s1315_s1 + $0x2c8] sm:$0xff]  ;;  %v107_v40 = vld [vmem:[%s1315_s1 + $0x2c0] sm:$0xff] }
  0x34   :  { %v101_v34 = vld [vmem:[%s1315_s1 + $0x290] sm:$0xff]  ;;  %v120_v42 = vld [vmem:[%s1315_s1 + $0x328] sm:$0xff]  ;;  %v119_v46 = vld [vmem:[%s1315_s1 + $0x320] sm:$0xff] }
  0x35   :  { %594 = vmatpush1.bf16.msra.mxu0 %v593_v31  ;;  %v677_v31 = vpack.c.bf16 %v89_v27, %v83_v26  ;;  %v113_v41 = vld [vmem:[%s1315_s1 + $0x2f0] sm:$0xff]  ;;  %v132_v48 = vld [vmem:[%s1315_s1 + $0x388] sm:$0xff]  ;;  %v131_v52 = vld [vmem:[%s1315_s1 + $0x380] sm:$0xff] }
  0x36   :  { %650 = vmatpush1.bf16.msra.mxu1 %v649_v32  ;;  %596 = vmatprep.subr.bf16.mxu0 %v595_v33  ;;  %v679_v32 = vpack.c.bf16 %v102_v30, %v96_v29  ;;  %v95_v33 = vld [vmem:[%s1315_s1 + $0x260] sm:$0xff]  ;;  %v125_v47 = vld [vmem:[%s1315_s1 + $0x350] sm:$0xff]  ;;  %v144_v54 = vld [vmem:[%s1315_s1 + $0x3e8] sm:$0xff] }
  0x37   :  { %652 = vmatprep.subr.bf16.mxu1 %v651_v37  ;;  %v114_v37 = vld [vmem:[%s1315_s1 + $0x2f8] sm:$0xff]  ;;  %v681_v38 = vpack.c.bf16 %v101_v34, %v95_v33  ;;  %v689_v50 = vpack.c.bf16 %v125_v47, %v119_v46  ;;  %v137_v53 = vld [vmem:[%s1315_s1 + $0x3b0] sm:$0xff]  ;;  %v143_v59 = vld [vmem:[%s1315_s1 + $0x3e0] sm:$0xff] }
  0x38   :  { %v683_v39 = vpack.c.bf16 %v114_v37, %v108_v36  ;;  %v149_v60 = vld [vmem:[%s1315_s1 + $0x410] sm:$0xff]  ;;  %v156_v61 = vld [vmem:[%s1315_s1 + $0x448] sm:$0xff]  ;;  %v155_v2 = vld [vmem:[%s1315_s1 + $0x440] sm:$0xff] }
  0x39   :  { %598 = vmatpush1.bf16.msra.mxu0 %v597_v43  ;;  %v126_v43 = vld [vmem:[%s1315_s1 + $0x358] sm:$0xff]  ;;  %v697_v63 = vpack.c.bf16 %v149_v60, %v143_v59  ;;  %v173_v9 = vld [vmem:[%s1315_s1 + $0x4d0] sm:$0xff]  ;;  %v180_v10 = vld [vmem:[%s1315_s1 + $0x508] sm:$0xff] }
  0x3a   :  { %654 = vmatpush1.bf16.msra.mxu1 %v653_v44  ;;  %656 = vmatprep.subr.bf16.mxu0 %v655_v45  ;;  %v685_v44 = vpack.c.bf16 %v113_v41, %v107_v40  ;;  %v687_v45 = vpack.c.bf16 %v126_v43, %v120_v42  ;;  %v179_v14 = vld [vmem:[%s1315_s1 + $0x500] sm:$0xff]  ;;  %v185_v15 = vld [vmem:[%s1315_s1 + $0x530] sm:$0xff] }
  0x3b   :  { %712 = vmatprep.subr.bf16.mxu1 %v711_v49  ;;  %v138_v49 = vld [vmem:[%s1315_s1 + $0x3b8] sm:$0xff] }
  0x3c   :  { %256 = vmatmul.mubr.f32.vlgmr.msra.gmra.mrb[0].mxu0 %v1130_v55  ;;  %v691_v51 = vpack.c.bf16 %v138_v49, %v132_v48 }
  0x3d   :  { %327 = vmatmul.mubr.f32.vlgmr.msra.gmra.mrb[0].mxu1 %v1130_v55  ;;  %658 = vmatpush1.bf16.msra.mxu0 %v657_v56  ;;  %v150_v56 = vld [vmem:[%s1315_s1 + $0x418] sm:$0xff] }
  0x3e   :  { %714 = vmatpush1.bf16.msra.mxu1 %v713_v57  ;;  %660 = vmatprep.subr.bf16.mxu0 %v659_v58  ;;  %v693_v57 = vpack.c.bf16 %v137_v53, %v131_v52  ;;  %v695_v58 = vpack.c.bf16 %v150_v56, %v144_v54 }
  0x3f   :  { %716 = vmatprep.subr.bf16.mxu1 %v715_v62  ;;  %493 = vmatprep.mubr.f32.mxu1 %v720_v8  ;;  %v162_v62 = vld [vmem:[%s1315_s1 + $0x478] sm:$0xff] }
  0x40   :  { %538 = vmatprep.mubr.msk.f32.mxu0 %vm187_vm0, %v1010_v0  ;;  %v72_v0 = vld [vmem:[%s1315_s1 + $0x1a8] sm:$0xff]  ;;  %v699_v1 = vpack.c.bf16 %v162_v62, %v156_v61 }
  0x41   :  { %662 = vmatpush1.bf16.msra.mxu0 %v661_v3  ;;  %v671_v19 = vpack.c.bf16 %v78_v16, %v72_v0  ;;  %v161_v3 = vld [vmem:[%s1315_s1 + $0x470] sm:$0xff]  ;;  %v709_v0 = vpack.c.bf16 %v185_v15, %v179_v14 }
  0x42   :  { %718 = vmatpush1.bf16.msra.mxu1 %v717_v4  ;;  %664 = vmatprep.subr.bf16.mxu0 %v663_v5  ;;  %v168_v4 = vld [vmem:[%s1315_s1 + $0x4a8] sm:$0xff]  ;;  %v174_v5 = vld [vmem:[%s1315_s1 + $0x4d8] sm:$0xff]  ;;  %v701_v6 = vpack.c.bf16 %v161_v3, %v155_v2 }
  0x43   :  { %v703_v7 = vpack.c.bf16 %v174_v5, %v168_v4 }
  0x45   :  { %539 = vmatmul.mubr.msk.f32.vlgmr.msra.gmra.mrb[2].mxu1 %vm416_vm1, %v404_v12  ;;  %666 = vmatpush1.bf16.msra.mxu0 %v665_v11  ;;  %v186_v11 = vld [vmem:[%s1315_s1 + $0x538] sm:$0xff] }
  0x46   :  { %499 = vmatprep.mubr.f32.mxu1 %v720_v8  ;;  %668 = vmatprep.subr.bf16.mxu0 %v667_v13  ;;  %v707_v13 = vpack.c.bf16 %v186_v11, %v180_v10 }
  0x49   :  { %540 = vmatmul.mubr.msk.f32.gmra.mrb[4].mxu1 %vm416_vm1, %v405_v18  ;;  %670 = vmatpush1.bf16.msra.mxu0 %v669_v17 }
  0x4a   :  { %672 = vmatprep.subr.bf16.mxu0 %v671_v19  ;;  %505 = vmatprep.mubr.f32.mxu1 %v720_v8 }
  0x4d   :  { %674 = vmatpush1.bf16.msra.mxu0 %v673_v24  ;;  %541 = vmatmul.mubr.msk.f32.gmra.mrb[6].mxu1 %vm416_vm1, %v406_v28 }
  0x4e   :  { %676 = vmatprep.subr.bf16.mxu0 %v675_v25  ;;  %511 = vmatprep.mubr.f32.mxu1 %v720_v8  ;;  %v167_v8 = vld [vmem:[%s1315_s1 + $0x4a0] sm:$0xff] }
  0x4f   :  { %v705_v12 = vpack.c.bf16 %v173_v9, %v167_v8 }
  0x51   :  { %678 = vmatpush1.bf16.msra.mxu0 %v677_v31  ;;  %542 = vmatmul.mubr.msk.f32.gmra.mrb[8].mxu1 %vm416_vm1, %v407_v35 }
  0x52   :  { %680 = vmatprep.subr.bf16.mxu0 %v679_v32 }
  0x55   :  { %682 = vmatpush1.bf16.msra.mxu0 %v681_v38 }
  0x56   :  { %684 = vmatprep.subr.bf16.mxu0 %v683_v39 }
  0x59   :  { %686 = vmatpush1.bf16.msra.mxu0 %v685_v44 }
  0x5a   :  { %688 = vmatprep.subr.bf16.mxu0 %v687_v45 }
  0x5d   :  { %690 = vmatpush1.bf16.msra.mxu0 %v689_v50 }
  0x5e   :  { %692 = vmatprep.subr.bf16.mxu0 %v691_v51 }
  0x61   :  { %694 = vmatpush1.bf16.msra.mxu0 %v693_v57 }
  0x62   :  { %696 = vmatprep.subr.bf16.mxu0 %v695_v58 }
  0x65   :  { %698 = vmatpush1.bf16.msra.mxu0 %v697_v63 }
  0x66   :  { %700 = vmatprep.subr.bf16.mxu0 %v699_v1 }
  0x69   :  { %702 = vmatpush1.bf16.msra.mxu0 %v701_v6 }
  0x6a   :  { %704 = vmatprep.subr.bf16.mxu0 %v703_v7 }
  0x6d   :  { %706 = vmatpush1.bf16.msra.mxu0 %v705_v12 }
  0x6e   :  { %708 = vmatprep.subr.bf16.mxu0 %v707_v13 }
  0x71   :  { %710 = vmatpush1.bf16.msra.mxu0 %v709_v0 }
  0x74   :  { %398 = vmatmul.mubr.f32.vlgmr.msra.gmra.mrb[2].mxu0 %v1130_v55 }
 0x10f   :  { %v257_v16 = vpop.f32.mrb[0].mxu0 }
 0x110   :  { %v259_v17 = vpop.f32.mrb[1].mxu0  ;;  %v328_v18 = vpop.f32.mrb[0].mxu1 }
 0x111   :  { %v330_v19 = vpop.f32.mrb[1].mxu1 }
 0x118   :  { %v495_v20 = vpop.f32.mrb[2].mxu1 }
 0x119   :  { %v518_v21 = vmul.f32 %v495_v20, %v257_v16  ;;  %v497_v22 = vpop.f32.mrb[3].mxu1 }
 0x11a   :  { %v519_v23 = vmul.f32 %v497_v22, %v259_v17 }
 0x11c   :  { %v501_v24 = vpop.f32.mrb[4].mxu1 }
 0x11d   :  { %v520_v25 = vmul.f32 %v501_v24, %v328_v18  ;;  %v503_v26 = vpop.f32.mrb[5].mxu1 }
 0x11e   :  { %v521_v27 = vmul.f32 %v503_v26, %v330_v19 }
 0x11f   :  { %v522_v28 = vadd.f32 %v520_v25, %v518_v21 }
 0x120   :  { %v523_v29 = vadd.f32 %v521_v27, %v519_v23  ;;  %v507_v30 = vpop.f32.mrb[6].mxu1 }
 0x121   :  { %v509_v31 = vpop.f32.mrb[7].mxu1 }
 0x124   :  { %v513_v32 = vpop.f32.mrb[8].mxu1 }
 0x125   :  { %v515_v33 = vpop.f32.mrb[9].mxu1 }
 0x147   :  { %v399_v34 = vpop.f32.mrb[2].mxu0 }
 0x148   :  { %v524_v55 = vmul.f32 %v507_v30, %v399_v34  ;;  %v401_v35 = vpop.f32.mrb[3].mxu0 }
 0x149   :  { %v525_v36 = vmul.f32 %v509_v31, %v401_v35 }
 0x14a   :  { %v526_v37 = vadd.f32 %v524_v55, %v522_v28 }
 0x14b   :  { %v527_v38 = vadd.f32 %v525_v36, %v523_v29 }
 0x14c   :  { %v528_v39 = vadd.f32 %v526_v37, %v513_v32 }
 0x14d   :  { %v529_v40 = vadd.f32 %v527_v38, %v515_v33 }
 0x14e   :  { %530 = vst [vmem:[%s1319_s4] sm:$0xff] %v528_v39 }
 0x14f   :  { %531 = vst [vmem:[%s1319_s4 + $0x8] sm:$0xff] %v529_v40 }

</bundles_post_ra>
